<compile_context>
chip_gen: v6e
topology: v6e:2x2x1
jax: 0.10.0
libtpu: 0.0.40
codegen_flags: <defaults>
</compile_context>

<pallas_src>
import jax
import jax.numpy as jnp
import numpy as np
from jax.experimental import pallas as pl
from jax.experimental.pallas import tpu as pltpu


def _round_up(x, m):
    return ((x + m - 1) // m) * m


# ----------------------------- Router kernel --------------------------------
def _router_kernel(x_ref, wr_ref, logits_ref):
    logits_ref[...] = jnp.dot(x_ref[...], wr_ref[...],
                              preferred_element_type=jnp.float32)


def router_forward(x_pad, wr_pad, *, tile_rows):
    n_pad, d_pad = x_pad.shape
    e_lane = wr_pad.shape[1]
    num_tiles = n_pad // tile_rows
    rbytes = 2 * (tile_rows * d_pad + d_pad * e_lane + tile_rows * e_lane) * 4
    return pl.pallas_call(
        _router_kernel,
        out_shape=jax.ShapeDtypeStruct((n_pad, e_lane), jnp.float32),
        grid_spec=pltpu.PrefetchScalarGridSpec(
            num_scalar_prefetch=0,
            grid=(num_tiles,),
            in_specs=[
                pl.BlockSpec((tile_rows, d_pad), lambda i: (i, 0)),
                pl.BlockSpec((d_pad, e_lane), lambda i: (0, 0)),
            ],
            out_specs=pl.BlockSpec((tile_rows, e_lane), lambda i: (i, 0)),
        ),
        compiler_params=pltpu.CompilerParams(
            dimension_semantics=("parallel",),
            vmem_limit_bytes=int(min(max(rbytes * 2, 4 << 20), 96 << 20))),
    )(x_pad, wr_pad)


# --------------------- Grouped-matmul expert kernel --------------------------
def _moe_gmm_kernel(be_ref, x_ref, g_ref, w13_ref, w2_ref, out_ref):
    del be_ref                                   # only used by the index_maps
    h_pad = w2_ref.shape[1]
    x = x_ref[...]                                                  # (TM, Dp)
    h13 = jnp.dot(x, w13_ref[0], preferred_element_type=jnp.float32)  # (TM, 2Hp)
    h1 = h13[:, :h_pad]
    h3 = h13[:, h_pad:]
    h = (h1 * jax.nn.sigmoid(h1)) * h3                              # SiLU gate, f32
    y = jnp.dot(h.astype(w2_ref.dtype), w2_ref[0],
                preferred_element_type=jnp.float32)                 # (TM, Dp), f32
    out_ref[...] = g_ref[...] * y                                   # per-row gate


def moe_grouped_forward(block_expert, xs, gates, w13, w2, *, block_rows):
    cap_rows, d_pad = xs.shape
    e_tot, _, h2 = w13.shape
    h_pad = w2.shape[1]
    num_blocks = cap_rows // block_rows
    itemsize = jnp.dtype(xs.dtype).itemsize

    # VMEM budget from the actual (double-buffered) block sizes, with headroom.
    need = (2 * (d_pad * h2 + h_pad * d_pad) * itemsize     # fused weights
            + 2 * block_rows * d_pad * itemsize             # x blocks
            + 2 * block_rows * 4                            # gate blocks
            + 2 * block_rows * d_pad * 4                    # out blocks
            + block_rows * (h2 + h_pad + d_pad) * 4)        # f32 intermediates
    vmem_limit = int(min(max(need * 3 // 2, 8 << 20), 96 << 20))

    flops = int(6 * cap_rows * d_pad * h_pad)
    bytes_accessed = int(xs.size * itemsize + gates.size * 4
                         + w13.size * itemsize + w2.size * itemsize
                         + cap_rows * d_pad * 4)

    return pl.pallas_call(
        _moe_gmm_kernel,
        out_shape=jax.ShapeDtypeStruct((cap_rows, d_pad), jnp.float32),
        grid_spec=pltpu.PrefetchScalarGridSpec(
            num_scalar_prefetch=1,                  # block -> expert table (SMEM)
            grid=(num_blocks,),
            in_specs=[
                pl.BlockSpec((block_rows, d_pad), lambda b, be: (b, 0)),       # x rows
                pl.BlockSpec((block_rows, 1), lambda b, be: (b, 0)),           # gate
                pl.BlockSpec((1, d_pad, h2), lambda b, be: (be[b], 0, 0)),     # w1|w3
                pl.BlockSpec((1, h_pad, d_pad), lambda b, be: (be[b], 0, 0)),  # w2
            ],
            out_specs=pl.BlockSpec((block_rows, d_pad), lambda b, be: (b, 0)),
        ),
        compiler_params=pltpu.CompilerParams(
            dimension_semantics=("parallel",),
            vmem_limit_bytes=vmem_limit),
        cost_estimate=pl.CostEstimate(
            flops=flops,
            transcendentals=int(cap_rows * h_pad),
            bytes_accessed=bytes_accessed),
    )(block_expert, xs, gates, w13, w2)


# ------------------------------ Full forward ---------------------------------
def ffn_moe_forward(x, params, *, moe_active_experts, moe_aux_loss_coef,
                    block_rows=512, compute_dtype=jnp.float32):
    B, T, D = x.shape
    N = B * T
    E = params["wr"].shape[1]
    H = params["w1"].shape[2]
    S = params["w1_s"].shape[0]
    k = moe_active_experts
    e_tot = E + S

    x_flat = x.reshape(N, D)

    # ----------------- Router (f32 Pallas matmul, lane-dense logits) ----------
    d_pad_r = _round_up(D, 128)
    e_lane = _round_up(E, 128)
    tr = min(512, _round_up(N, 8))
    n_pad_r = _round_up(N, tr)
    x_r = jnp.zeros((n_pad_r, d_pad_r), jnp.float32).at[:N, :D].set(
        x_flat.astype(jnp.float32))
    wr_pad = jnp.zeros((d_pad_r, e_lane), jnp.float32).at[:D, :E].set(
        params["wr"].astype(jnp.float32))
    logits = router_forward(x_r, wr_pad, tile_rows=tr)[:N, :E]

    probs = jax.nn.softmax(logits, axis=-1)
    _, topk_idx = jax.lax.top_k(logits, k)                 # router_out.topk(k)
    # probability of each selected expert (== router_probs.topk(k) values).
    topk_probs = jnp.take_along_axis(probs, topk_idx, axis=-1)

    # Auxiliary load-balancing loss (use_lossfreebalance = False path).
    expert_mask = jax.nn.one_hot(topk_idx[:, 0], E, dtype=jnp.float32)
    aux_loss = moe_aux_loss_coef * jnp.sum(expert_mask.mean(0) * probs.mean(0)) * E

    # --------------- Grouped (sorted-by-expert) sparse dispatch ---------------
    lane = 256 if compute_dtype == jnp.bfloat16 else 128   # 256x256 MXU on v6e/v7x
    d_pad = _round_up(D, lane)
    h_pad = _round_up(H, lane)

    tok_ids = jnp.repeat(jnp.arange(N, dtype=jnp.int32), k)
    exp_ids = topk_idx.reshape(-1).astype(jnp.int32)
    gate_vals = topk_probs.reshape(-1).astype(jnp.float32)
    if S > 0:   # shared experts: every token, gate 1.0, expert ids E..E+S-1
        tok_ids = jnp.concatenate([tok_ids, jnp.tile(jnp.arange(N, dtype=jnp.int32), S)])
        exp_ids = jnp.concatenate([exp_ids,
                                   jnp.repeat(jnp.arange(E, e_tot, dtype=jnp.int32), N)])
        gate_vals = jnp.concatenate([gate_vals, jnp.ones((N * S,), jnp.float32)])
    A = int(tok_ids.shape[0])

    tm = _round_up(max(8, min(block_rows, _round_up(A, 8))), 8)
    cap_rows = _round_up(A + e_tot * (tm - 1), tm)     # static upper bound
    num_blocks = cap_rows // tm

    order = jnp.argsort(exp_ids)
    s_tok, s_exp, s_gate = tok_ids[order], exp_ids[order], gate_vals[order]

    counts = jnp.bincount(exp_ids, length=e_tot).astype(jnp.int32)
    grp_start = jnp.cumsum(counts) - counts
    pad_size = ((counts + tm - 1) // tm) * tm           # group sizes padded to tm
    pad_off = jnp.cumsum(pad_size) - pad_size
    pad_end = jnp.cumsum(pad_size)

    rank = jnp.arange(A, dtype=jnp.int32) - grp_start[s_exp]
    dest = pad_off[s_exp] + rank                        # row in the padded layout

    row_tok = jnp.zeros((cap_rows,), jnp.int32).at[dest].set(s_tok)
    row_gate = jnp.zeros((cap_rows,), jnp.float32).at[dest].set(s_gate)

    block_starts = jnp.arange(num_blocks, dtype=jnp.int32) * tm
    be = jnp.searchsorted(pad_end, block_starts, side="right")
    be = jnp.minimum(be, e_tot - 1)
    # Tail (fully padded) blocks reuse the last real expert -> no extra weight DMA.
    be = jnp.where(block_starts < pad_end[-1], be, s_exp[-1]).astype(jnp.int32)

    # Gathered LHS and weights in the MXU compute dtype.
    x_comp = jnp.zeros((N, d_pad), compute_dtype).at[:, :D].set(
        x_flat.astype(compute_dtype))
    xs = jnp.take(x_comp, row_tok, axis=0)              # (cap_rows, d_pad)
    gates = row_gate[:, None]                            # (cap_rows, 1)

    w1_all, w3_all, w2_all = params["w1"], params["w3"], params["w2"]
    if S > 0:
        w1_all = jnp.concatenate([w1_all, params["w1_s"]], axis=0)
        w3_all = jnp.concatenate([w3_all, params["w3_s"]], axis=0)
        w2_all = jnp.concatenate([w2_all, params["w2_s"]], axis=0)

    w13 = jnp.zeros((e_tot, d_pad, 2 * h_pad), jnp.float32)
    w13 = w13.at[:, :D, :H].set(w1_all.astype(jnp.float32))
    w13 = w13.at[:, :D, h_pad:h_pad + H].set(w3_all.astype(jnp.float32))
    w13 = w13.astype(compute_dtype)
    w2p = jnp.zeros((e_tot, h_pad, d_pad), jnp.float32).at[:, :H, :D].set(
        w2_all.astype(jnp.float32)).astype(compute_dtype)

    ys = moe_grouped_forward(be, xs, gates, w13, w2p, block_rows=tm)

    # Scatter-add the gated per-assignment outputs back to tokens (padding rows
    # carry gate 0 -> add exact zeros).
    out_flat = jnp.zeros((N, d_pad), jnp.float32).at[row_tok].add(ys)
    out = out_flat[:, :D].reshape(B, T, D).astype(x.dtype)
    return out, aux_loss


# ------------------------------ Pure-JAX reference ----------------------------
def ffn_moe_reference(x, params, *, moe_active_experts, moe_aux_loss_coef):
    B, T, D = x.shape
    N = B * T
    x_flat = x.reshape(N, D)
    E = params["wr"].shape[1]
    k = moe_active_experts

    logits = x_flat @ params["wr"]
    probs = jax.nn.softmax(logits, axis=-1)
    _, topk_idx = jax.lax.top_k(logits, k)
    topk_probs, _ = jax.lax.top_k(probs, k)

    expert_mask = jax.nn.one_hot(topk_idx[:, 0], E, dtype=jnp.float32)
    aux_loss = moe_aux_loss_coef * jnp.sum(expert_mask.mean(0) * probs.mean(0)) * E

    out = jnp.zeros_like(x_flat)
    for e in range(E):
        h = jax.nn.silu(x_flat @ params["w1"][e]) * (x_flat @ params["w3"][e])
        y = h @ params["w2"][e]
        g = jnp.zeros((N,), jnp.float32)
        for i in range(k):
            g = g + jnp.where(topk_idx[:, i] == e, topk_probs[:, i], 0.0)
        out = out + g[:, None] * y
    for s in range(params["w1_s"].shape[0]):
        h = jax.nn.silu(x_flat @ params["w1_s"][s]) * (x_flat @ params["w3_s"][s])
        out = out + h @ params["w2_s"][s]
    return out.reshape(B, T, D), aux_loss


if __name__ == "__main__":
    # Small config: num_dims=32, ffn_hidden_dims=64, 4 experts (top-2), 1 shared expert.
    B, T, D, H = 2, 8, 32, 64
    E, K, S = 4, 2, 1
    AUX_COEF = 0.01

    key = jax.random.PRNGKey(0)
    ks = jax.random.split(key, 8)
    scale = 0.05
    params = {
        "wr":   scale * jax.random.normal(ks[0], (D, E), jnp.float32),
        "w1":   scale * jax.random.normal(ks[1], (E, D, H), jnp.float32),
        "w2":   scale * jax.random.normal(ks[2], (E, H, D), jnp.float32),
        "w3":   scale * jax.random.normal(ks[3], (E, D, H), jnp.float32),
        "w1_s": scale * jax.random.normal(ks[4], (S, D, H), jnp.float32),
        "w2_s": scale * jax.random.normal(ks[5], (S, H, D), jnp.float32),
        "w3_s": scale * jax.random.normal(ks[6], (S, D, H), jnp.float32),
    }
    x = jax.random.normal(ks[7], (B, T, D), jnp.float32)

    ref_out, ref_aux = ffn_moe_reference(x, params, moe_active_experts=K,
                                         moe_aux_loss_coef=AUX_COEF)

    # f32 MXU path (exact vs reference).
    out32, aux32 = ffn_moe_forward(x, params, moe_active_experts=K,
                                   moe_aux_loss_coef=AUX_COEF,
                                   block_rows=128, compute_dtype=jnp.float32)
    out32 = jax.block_until_ready(out32)
    aux32 = jax.block_until_ready(aux32)
    np.testing.assert_allclose(np.asarray(out32), np.asarray(ref_out), rtol=1e-4, atol=1e-4)
    np.testing.assert_allclose(np.asarray(aux32), np.asarray(ref_aux), rtol=1e-4, atol=1e-5)

    # bf16 MXU path (production setting for v6e/v7x, 256-aligned dims) — looser tolerance.
    out16, aux16 = ffn_moe_forward(x, params, moe_active_experts=K,
                                   moe_aux_loss_coef=AUX_COEF,
                                   block_rows=128, compute_dtype=jnp.bfloat16)
    out16 = jax.block_until_ready(out16)
    np.testing.assert_allclose(np.asarray(out16), np.asarray(ref_out), rtol=5e-2, atol=5e-3)
    np.testing.assert_allclose(np.asarray(aux16), np.asarray(ref_aux), rtol=1e-4, atol=1e-5)

    # Larger, multi-block case (exercises grouping, padding and block->expert table).
    B2, T2 = 2, 100
    x2 = jax.random.normal(jax.random.PRNGKey(1), (B2, T2, D), jnp.float32)
    ref_out2, ref_aux2 = ffn_moe_reference(x2, params, moe_active_experts=K,
                                           moe_aux_loss_coef=AUX_COEF)
    out2, aux2 = ffn_moe_forward(x2, params, moe_active_experts=K,
                                 moe_aux_loss_coef=AUX_COEF,
                                 block_rows=64, compute_dtype=jnp.float32)
    out2 = jax.block_until_ready(out2)
    np.testing.assert_allclose(np.asarray(out2), np.asarray(ref_out2), rtol=1e-4, atol=1e-4)
    np.testing.assert_allclose(np.asarray(aux2), np.asarray(ref_aux2), rtol=1e-4, atol=1e-5)

    print("KERNEL_OK")
</pallas_src>

<mosaic_0001>
module attributes {stable_mosaic.version = 11 : i64} {
  func.func @_router_kernel(%arg0: i32, %arg1: memref<16x128xf32, #tpu.memory_space<vmem>>, %arg2: memref<128x128xf32, #tpu.memory_space<vmem>>, %arg3: memref<16x128xf32, #tpu.memory_space<vmem>>) attributes {dimension_semantics = [#tpu.dimension_semantics<parallel>], iteration_bounds = array<i64: 1>, scalar_prefetch = 0 : i64, scratch_operands = 0 : i64, tpu.core_type = #tpu.core_type<tc>, window_params = [{transform_indices = @transform_0, window_bounds = array<i64: 16, 128>}, {pipeline_mode = #tpu.pipeline_mode<synchronous>, transform_indices = @transform_1, window_bounds = array<i64: 128, 128>}, {transform_indices = @transform_2, window_bounds = array<i64: 16, 128>}]} {
    %c0 = arith.constant 0 : index
    %c0_0 = arith.constant 0 : index
    %0 = vector.load %arg1[%c0, %c0_0] : memref<16x128xf32, #tpu.memory_space<vmem>>, vector<16x128xf32>
    %c0_1 = arith.constant 0 : index
    %c0_2 = arith.constant 0 : index
    %1 = vector.load %arg2[%c0_1, %c0_2] : memref<128x128xf32, #tpu.memory_space<vmem>>, vector<128x128xf32>
    %cst = arith.constant dense<0.000000e+00> : vector<16x128xf32>
    %2 = tpu.matmul %0, %1, %cst {dimension_numbers = #tpu.dot_dimension_numbers<[1], [0], [0], [1], [0, 0, 1, 1], [], []>} : vector<16x128xf32>, vector<128x128xf32>, vector<16x128xf32> -> vector<16x128xf32>
    %c0_3 = arith.constant 0 : index
    %c0_4 = arith.constant 0 : index
    %3 = vector.load %arg3[%c0_3, %c0_4] : memref<16x128xf32, #tpu.memory_space<vmem>>, vector<16x128xf32>
    tpu.vector_store %arg3[%c0_3, %c0_4], %2 {strides = array<i32>} : memref<16x128xf32, #tpu.memory_space<vmem>>, vector<16x128xf32>,
    return
  }
  func.func @transform_0(%arg0: i32) -> (i32, i32) {
    %c0_i32 = arith.constant 0 : i32
    %c0_i32_0 = arith.constant 0 : i32
    return %arg0, %c0_i32 : i32, i32
  }
  func.func @transform_1(%arg0: i32) -> (i32, i32) {
    %c0_i32 = arith.constant 0 : i32
    %c0_i32_0 = arith.constant 0 : i32
    %c0_i32_1 = arith.constant 0 : i32
    return %c0_i32, %c0_i32_0 : i32, i32
  }
  func.func @transform_2(%arg0: i32) -> (i32, i32) {
    %c0_i32 = arith.constant 0 : i32
    %c0_i32_0 = arith.constant 0 : i32
    return %arg0, %c0_i32 : i32, i32
  }
}

</mosaic_0001>

<bundles_post_ra>
// kernel: tpu_custom_call.1
= control target key start
LH: loop header
LB: loop body
LE: loop exit
PB: predicated region body
PF: predicated region fallthrough
CT: control target
= control target key end

     0   :  { %7 = vsyncpa [#allocation3], 0  ;;  %s315_s0 = inlined_call_operand.hbm [shape: f32[16,128], index: 0, kind: input, shape index: {}]   ;;  %s316_s1 = inlined_call_operand.hbm [shape: f32[128,128], index: 1, kind: input, shape index: {}]   ;;  %s317_s2 = inlined_call_operand.hbm [shape: f32[16,128], index: 2, kind: output, shape index: {}]  }
   0x1   :  { %8 = vsyncpa [#allocation6], 0 }
   0x2   :  { %9 = vsyncpa [#allocation4], 0  ;;  %s277_s9 = smov [#allocation2]  }
   0x3   :  { %s15_s10 = sshll.u32 %s277_s9, 4  ;;  %s16_s10 = int_to_ptr.vmem [resolvable:$true] %s15_s10 }
   0x4   :  { %s219_s11 = scalar_lea.vmem %s16_s10, 256  ;;  %p224_p1 = scmp.lt.s32.totalorder %s16_s10, %s16_s10 }
   0x5   :  { %p220_p0 = scmp.ne.s32.totalorder %s16_s10, %s219_s11  ;;  %p225_p2 = scmp.lt.s32.totalorder %s219_s11, %s219_s11 }
   0x7   :  { %p226_p3 = por %p225_p2, %p224_p1 }
   0x9   :  { %p227_p4 = pnand %p226_p3, %p220_p0 }
   0xb   :  { %230 = shalt.err (!%p227_p4)
}
   0xc   :  { %s278_s12 = smov 128   ;;  %s279_s13 = smov 8  }
   0xd   :  { %21 = dma.hbm_to_vmem [thread:$0]  %s315_s0, 256, %s16_s10, [#allocation3], %s278_s12, %s278_s12, %s279_s13  }
   0xe   :  { %s280_s16 = smov [#allocation5]  }
   0xf   :  { %s27_s17 = sshll.u32 %s280_s16, 4  ;;  %s28_s17 = int_to_ptr.vmem [resolvable:$true] %s27_s17 }
  0x10   :  { %s239_s18 = scalar_lea.vmem %s28_s17, 2048  ;;  %p244_p6 = scmp.lt.s32.totalorder %s28_s17, %s28_s17 }
  0x11   :  { %p240_p5 = scmp.ne.s32.totalorder %s28_s17, %s239_s18  ;;  %p245_p7 = scmp.lt.s32.totalorder %s239_s18, %s239_s18 }
  0x13   :  { %p246_p8 = por %p245_p7, %p244_p6 }
  0x15   :  { %p247_p9 = pnand %p246_p8, %p240_p5 }
  0x17   :  { %250 = shalt.err (!%p247_p9)
}
  0x18   :  { %33 = dma.hbm_to_vmem [thread:$0]  %s316_s1, 2048, %s28_s17, [#allocation6], %s278_s12, %s278_s12, %s279_s13  }
  0x19   :  { %271 = dma.done.wait [#allocation3], 256  }
  0x1a   :  { %272 = vsyncadd [#allocation3], 4294967040 }
  0x1b   :  { %273 = dma.done.wait [#allocation6], 2048  }
  0x1c   :  { %274 = vsyncadd [#allocation6], 4294965248  ;;  %v57_v0 = vld [vmem:[#allocation5 + $0x78] sm:$0xff]  ;;  %v56_v1 = vld [vmem:[#allocation5 + $0x70] sm:$0xff]  ;;  %s281_s0 = smov [#allocation7]  }
  0x1d   :  { %171 = vmatprep.subr.mxu0 %v57_v0  ;;  %v55_v2 = vld [vmem:[#allocation5 + $0x68] sm:$0xff]  ;;  %v54_v3 = vld [vmem:[#allocation5 + $0x60] sm:$0xff]  ;;  %v40_v4 = vld [vmem:[#allocation2] sm:$0xff]  ;;  %s140_s1 = sshll.u32 %s281_s0, 4  ;;  %s141_s1 = int_to_ptr.vmem [resolvable:$true] %s140_s1 }
  0x1e   :  { %172 = vmatpush3.msra.mxu0 %v57_v0  ;;  %v53_v5 = vld [vmem:[#allocation5 + $0x58] sm:$0xff]  ;;  %203 = vmatprep.mubr.f32.mxu0 %v40_v4  ;;  %v52_v6 = vld [vmem:[#allocation5 + $0x50] sm:$0xff]  ;;  %v51_v7 = vld [vmem:[#allocation5 + $0x48] sm:$0xff]  ;;  %s251_s21 = scalar_lea.vmem %s141_s1, 256  ;;  %p256_p11 = scmp.lt.s32.totalorder %s141_s1, %s141_s1 }
  0x1f   :  { %173 = vmatprep.subr.mxu0 %v56_v1  ;;  %v50_v8 = vld [vmem:[#allocation5 + $0x40] sm:$0xff]  ;;  %v49_v9 = vld [vmem:[#allocation5 + $0x38] sm:$0xff]  ;;  %v48_v10 = vld [vmem:[#allocation5 + $0x30] sm:$0xff]  ;;  %p252_p10 = scmp.ne.s32.totalorder %s141_s1, %s251_s21  ;;  %p257_p12 = scmp.lt.s32.totalorder %s251_s21, %s251_s21 }
  0x20   :  { %174 = vmatpush3.msra.mxu0 %v56_v1  ;;  %v47_v11 = vld [vmem:[#allocation5 + $0x28] sm:$0xff]  ;;  %v46_v12 = vld [vmem:[#allocation5 + $0x20] sm:$0xff]  ;;  %v45_v13 = vld [vmem:[#allocation5 + $0x18] sm:$0xff] }
  0x21   :  { %175 = vmatprep.subr.mxu0 %v55_v2  ;;  %v44_v14 = vld [vmem:[#allocation5 + $0x10] sm:$0xff]  ;;  %v43_v15 = vld [vmem:[#allocation5 + $0x8] sm:$0xff]  ;;  %v42_v16 = vld [vmem:[#allocation5] sm:$0xff]  ;;  %p258_p13 = por %p257_p12, %p256_p11 }
  0x22   :  { %176 = vmatpush3.msra.mxu0 %v55_v2  ;;  %v41_v17 = vld [vmem:[#allocation2 + $0x8] sm:$0xff] }
  0x23   :  { %177 = vmatprep.subr.mxu0 %v54_v3  ;;  %p259_p0 = pnand %p258_p13, %p252_p10 }
  0x24   :  { %178 = vmatpush3.msra.mxu0 %v54_v3 }
  0x25   :  { %179 = vmatprep.subr.mxu0 %v53_v5 }
  0x26   :  { %180 = vmatpush3.msra.mxu0 %v53_v5 }
  0x27   :  { %181 = vmatprep.subr.mxu0 %v52_v6 }
  0x28   :  { %182 = vmatpush3.msra.mxu0 %v52_v6 }
  0x29   :  { %183 = vmatprep.subr.mxu0 %v51_v7 }
  0x2a   :  { %184 = vmatpush3.msra.mxu0 %v51_v7 }
  0x2b   :  { %185 = vmatprep.subr.mxu0 %v50_v8 }
  0x2c   :  { %186 = vmatpush3.msra.mxu0 %v50_v8 }
  0x2d   :  { %187 = vmatprep.subr.mxu0 %v49_v9 }
  0x2e   :  { %188 = vmatpush3.msra.mxu0 %v49_v9 }
  0x2f   :  { %189 = vmatprep.subr.mxu0 %v48_v10 }
  0x30   :  { %190 = vmatpush3.msra.mxu0 %v48_v10 }
  0x31   :  { %191 = vmatprep.subr.mxu0 %v47_v11 }
  0x32   :  { %192 = vmatpush3.msra.mxu0 %v47_v11 }
  0x33   :  { %193 = vmatprep.subr.mxu0 %v46_v12 }
  0x34   :  { %194 = vmatpush3.msra.mxu0 %v46_v12 }
  0x35   :  { %195 = vmatprep.subr.mxu0 %v45_v13 }
  0x36   :  { %196 = vmatpush3.msra.mxu0 %v45_v13 }
  0x37   :  { %197 = vmatprep.subr.mxu0 %v44_v14 }
  0x38   :  { %198 = vmatpush3.msra.mxu0 %v44_v14 }
  0x39   :  { %199 = vmatprep.subr.mxu0 %v43_v15 }
  0x3a   :  { %200 = vmatpush3.msra.mxu0 %v43_v15 }
  0x3b   :  { %201 = vmatprep.subr.mxu0 %v42_v16 }
  0x3c   :  { %202 = vmatpush3.msra.mxu0 %v42_v16 }
  0x3d   :  { %204 = vmatmul.mubr.f32.vlgmr.msra.gmra.mxu0 %v41_v17 }
  0xfd   :  { %v205_v18 = vpop.f32.mrf.mxu0 }
  0xfe   :  { %134 = vst [vmem:[#allocation7 + $0x8] sm:$0xff] %v205_v18 }
  0xff   :  { %v124_v19 = vpop.f32.mrf.mxu0 }
 0x100   :  { %133 = vst [vmem:[#allocation7] sm:$0xff] %v124_v19 }
 0x101   :  { %262 = shalt.err (!%p259_p0)
}
 0x102   :  { %146 = dma.vmem_to_hbm [thread:$0]  %s141_s1, 256, %s317_s2, [#allocation4], %s278_s12, %s278_s12, %s279_s13  }
 0x103   :  { %275 = dma.done.wait [#allocation4], 256  }
 0x104   :  { %276 = vsyncadd [#allocation4], 4294967040 }
 0x105   :  { %150 = vsyncpa [#allocation3], 1 }
 0x106   :  { %151 = vsyncpa [#allocation6], 1 }
 0x107   :  { %152 = vsyncpa [#allocation4], 1 }

</bundles_post_ra>
